<compile_context>
chip_gen: v6e
topology: v6e:2x2x1
jax: 0.10.0
libtpu: 0.0.40
codegen_flags: <defaults>
</compile_context>

<pallas_src>
import functools

import jax
import jax.numpy as jnp
from jax.experimental import pallas as pl
from jax.experimental.pallas import tpu as pltpu


def _round_up(x: int, m: int) -> int:
    return ((x + m - 1) // m) * m


# --------------------------------------------------------------------------
# Kernel
# --------------------------------------------------------------------------
def _policy_kernel(x_ref, w1_ref, b1_ref, w2_ref, b2_ref, w3_ref, b3_ref,
                   out_ref):
    """Fused 3-layer MLP + log-softmax for one batch tile.

    x_ref : (TILE_B, F)     f32   (streamed, unpadded feature dim)
    w1_ref: (F,   H_p)      bf16  (VMEM-resident, zero-padded hidden cols)
    w2_ref: (H_p, H_p)      bf16
    w3_ref: (H_p, n_act)    bf16  (compact action dim, no padding)
    b*_ref: (1, .)          f32
    out   : (TILE_B, n_act) f32   normalized logits (log-probs)
    Zero-padded hidden lanes stay exactly 0 through Linear+ReLU, so padding
    is a mathematical no-op.
    """
    x = x_ref[...]

    # Layer 1: Linear + ReLU  (bf16 MXU inputs, f32 accumulate/epilogue)
    h = jnp.dot(x.astype(jnp.bfloat16), w1_ref[...],
                preferred_element_type=jnp.float32)
    h = jnp.maximum(h + b1_ref[...], 0.0)

    # Layer 2: Linear + ReLU  (n_layers = 1)
    h = jnp.dot(h.astype(jnp.bfloat16), w2_ref[...],
                preferred_element_type=jnp.float32)
    h = jnp.maximum(h + b2_ref[...], 0.0)

    # Output layer: Linear -> raw logits over the real actions only.
    z = jnp.dot(h.astype(jnp.bfloat16), w3_ref[...],
                preferred_element_type=jnp.float32)
    z = z + b3_ref[...]

    # Categorical(logits=z).logits == z - logsumexp(z, -1)
    m = jnp.max(z, axis=-1, keepdims=True)
    zs = z - m
    lse = jnp.log(jnp.sum(jnp.exp(zs), axis=-1, keepdims=True))
    out_ref[...] = (zs - lse).astype(out_ref.dtype)


# --------------------------------------------------------------------------
# One-time parameter preparation (hoisted out of the per-call path)
# --------------------------------------------------------------------------
def prepare_params(w1, b1, w2, b2, w3, b3):
    """Pad hidden dim to 128 lanes and pre-cast weights to bf16. Call ONCE.

    Weights are (in, out) layout — the transpose of torch nn.Linear.weight.
    Returns (w1p, b1p, w2p, b2p, w3p, b3p) ready for discrete_policy_forward.
    """
    F, ni = w1.shape
    na = w3.shape[1]
    H_p = _round_up(ni, 128)

    bf = jnp.bfloat16
    w1p = jnp.zeros((F, H_p), bf).at[:, :ni].set(w1.astype(bf))
    b1p = jnp.zeros((1, H_p), jnp.float32).at[:, :ni].set(
        jnp.reshape(b1, (1, ni)).astype(jnp.float32))
    w2p = jnp.zeros((H_p, H_p), bf).at[:ni, :ni].set(w2.astype(bf))
    b2p = jnp.zeros((1, H_p), jnp.float32).at[:, :ni].set(
        jnp.reshape(b2, (1, ni)).astype(jnp.float32))
    w3p = jnp.zeros((H_p, na), bf).at[:ni, :].set(w3.astype(bf))
    b3p = jnp.reshape(b3, (1, na)).astype(jnp.float32)
    return w1p, b1p, w2p, b2p, w3p, b3p


# --------------------------------------------------------------------------
# Forward
# --------------------------------------------------------------------------
@functools.partial(jax.jit, static_argnames=("tile_b",))
def discrete_policy_forward(x, w1p, b1p, w2p, b2p, w3p, b3p, tile_b=1024):
    """Returns Categorical(logits=net(x)).logits, i.e. normalized log-probs.

    Takes the padded/bf16 params produced by prepare_params().
    """
    B, F = x.shape
    na = w3p.shape[1]

    # Batch tiling: multiple of 8 sublanes; capped so the grid has >= 2 steps
    # whenever B allows it (lets the "parallel" axis shard over v7x's 2 TCs).
    TILE_B = min(tile_b, _round_up(B, 8))
    TILE_B = min(TILE_B, max(8, _round_up((B + 1) // 2, 8)))
    B_p = _round_up(B, TILE_B)

    # Only pad the batch axis (at most TILE_B-1 zero rows); x's feature dim
    # is streamed unpadded.
    xp = x if B_p == B else jnp.pad(x, ((0, B_p - B), (0, 0)))

    grid = (B_p // TILE_B,)

    # Weights/biases: same block every grid step -> stay VMEM-resident.
    def resident(arr):
        return pl.BlockSpec(arr.shape, lambda i: (0, 0))

    out = pl.pallas_call(
        _policy_kernel,
        out_shape=jax.ShapeDtypeStruct((B_p, na), jnp.float32),
        grid=grid,
        in_specs=[
            pl.BlockSpec((TILE_B, F), lambda i: (i, 0)),   # streamed x tiles
            resident(w1p), resident(b1p),
            resident(w2p), resident(b2p),
            resident(w3p), resident(b3p),
        ],
        out_specs=pl.BlockSpec((TILE_B, na), lambda i: (i, 0)),  # compact logits
        compiler_params=pltpu.CompilerParams(
            dimension_semantics=("parallel",),       # shards grid over TCs (v7x)
            vmem_limit_bytes=32 * 1024 * 1024,       # safe on v5e/v6e/v7x
        ),
    )(xp, w1p, b1p, w2p, b2p, w3p, b3p)

    return out[:B]


# --------------------------------------------------------------------------
# Init + references
# --------------------------------------------------------------------------
def init_params(key, n_features, n_actions, n_intermediate):
    """Deterministic init mimicking nn.Linear's U(-1/sqrt(fan_in), 1/sqrt(fan_in))."""
    def linear(key, fan_in, fan_out):
        kw, kb = jax.random.split(key)
        bound = 1.0 / jnp.sqrt(jnp.float32(fan_in))
        w = jax.random.uniform(kw, (fan_in, fan_out), jnp.float32, -bound, bound)
        b = jax.random.uniform(kb, (1, fan_out), jnp.float32, -bound, bound)
        return w, b

    k1, k2, k3 = jax.random.split(key, 3)
    w1, b1 = linear(k1, n_features, n_intermediate)
    w2, b2 = linear(k2, n_intermediate, n_intermediate)
    w3, b3 = linear(k3, n_intermediate, n_actions)
    return w1, b1, w2, b2, w3, b3


def reference_forward_bf16(x, w1, b1, w2, b2, w3, b3):
    """Pure-JAX reference mirroring the kernel's dtype policy (bf16 matmuls)."""
    bf = jnp.bfloat16
    h = jnp.maximum(
        jnp.dot(x.astype(bf), w1.astype(bf),
                preferred_element_type=jnp.float32) + b1, 0.0)
    h = jnp.maximum(
        jnp.dot(h.astype(bf), w2.astype(bf),
                preferred_element_type=jnp.float32) + b2, 0.0)
    z = jnp.dot(h.astype(bf), w3.astype(bf),
                preferred_element_type=jnp.float32) + b3
    return jax.nn.log_softmax(z, axis=-1)


def reference_forward_f32(x, w1, b1, w2, b2, w3, b3):
    """Pure-f32 reference matching the PyTorch module exactly (up to MXU dtype)."""
    h = jnp.maximum(jnp.dot(x, w1) + b1, 0.0)
    h = jnp.maximum(jnp.dot(h, w2) + b2, 0.0)
    z = jnp.dot(h, w3) + b3
    return jax.nn.log_softmax(z, axis=-1)


# --------------------------------------------------------------------------
# Self-test
# --------------------------------------------------------------------------
if __name__ == "__main__":
    # Shapes consistent with DiscretePolicy(n_features=32, n_actions=6,
    # n_intermediate=10, n_layers=1), batch of 8.
    B, n_features, n_actions, n_intermediate = 8, 32, 6, 10

    key = jax.random.PRNGKey(0)
    kx, kp = jax.random.split(key)
    x = jax.random.normal(kx, (B, n_features), jnp.float32)
    raw_params = init_params(kp, n_features, n_actions, n_intermediate)

    # One-time param preparation (padding + bf16 cast) — NOT in the hot path.
    packed = prepare_params(*raw_params)
    packed = jax.block_until_ready(packed)

    out = discrete_policy_forward(x, *packed)
    out = jax.block_until_ready(out)

    assert out.shape == (B, n_actions)

    # Tight check vs. a reference that mirrors the kernel's bf16-MXU policy.
    ref_bf16 = reference_forward_bf16(x, *raw_params)
    assert jnp.allclose(out, ref_bf16, atol=2e-3, rtol=2e-3), \
        "mismatch vs bf16-matmul reference"

    # Loose check vs. the true f32 module semantics (bf16 MXU inputs introduce
    # ~1e-2-level differences; this catches gross errors like transposed weights).
    ref_f32 = reference_forward_f32(x, *raw_params)
    assert jnp.allclose(out, ref_f32, atol=5e-2, rtol=5e-2), \
        "mismatch vs f32 reference"

    # Normalized logits must exponentiate to a valid distribution.
    assert jnp.allclose(jnp.sum(jnp.exp(out), axis=-1), 1.0, atol=1e-4)

    print("KERNEL_OK")
</pallas_src>

<mosaic_0001>
module attributes {stable_mosaic.version = 11 : i64} {
  func.func @_policy_kernel(%arg0: i32, %arg1: memref<8x32xf32, #tpu.memory_space<vmem>>, %arg2: memref<32x128xbf16, #tpu.memory_space<vmem>>, %arg3: memref<1x128xf32, #tpu.memory_space<vmem>>, %arg4: memref<128x128xbf16, #tpu.memory_space<vmem>>, %arg5: memref<1x128xf32, #tpu.memory_space<vmem>>, %arg6: memref<128x6xbf16, #tpu.memory_space<vmem>>, %arg7: memref<1x6xf32, #tpu.memory_space<vmem>>, %arg8: memref<8x6xf32, #tpu.memory_space<vmem>>) attributes {dimension_semantics = [#tpu.dimension_semantics<parallel>], iteration_bounds = array<i64: 1>, scalar_prefetch = 0 : i64, scratch_operands = 0 : i64, tpu.core_type = #tpu.core_type<tc>, window_params = [{transform_indices = @transform_0, window_bounds = array<i64: 8, 32>}, {pipeline_mode = #tpu.pipeline_mode<synchronous>, transform_indices = @transform_1, window_bounds = array<i64: 32, 128>}, {pipeline_mode = #tpu.pipeline_mode<synchronous>, transform_indices = @transform_2, window_bounds = array<i64: 1, 128>}, {pipeline_mode = #tpu.pipeline_mode<synchronous>, transform_indices = @transform_3, window_bounds = array<i64: 128, 128>}, {pipeline_mode = #tpu.pipeline_mode<synchronous>, transform_indices = @transform_4, window_bounds = array<i64: 1, 128>}, {pipeline_mode = #tpu.pipeline_mode<synchronous>, transform_indices = @transform_5, window_bounds = array<i64: 128, 6>}, {pipeline_mode = #tpu.pipeline_mode<synchronous>, transform_indices = @transform_6, window_bounds = array<i64: 1, 6>}, {transform_indices = @transform_7, window_bounds = array<i64: 8, 6>}]} {
    %c0 = arith.constant 0 : index
    %c0_0 = arith.constant 0 : index
    %0 = vector.load %arg1[%c0, %c0_0] : memref<8x32xf32, #tpu.memory_space<vmem>>, vector<8x32xf32>
    %1 = arith.truncf %0 : vector<8x32xf32> to vector<8x32xbf16>
    %c0_1 = arith.constant 0 : index
    %c0_2 = arith.constant 0 : index
    %2 = vector.load %arg2[%c0_1, %c0_2] : memref<32x128xbf16, #tpu.memory_space<vmem>>, vector<32x128xbf16>
    %cst = arith.constant dense<0.000000e+00> : vector<8x128xf32>
    %3 = tpu.matmul %1, %2, %cst {dimension_numbers = #tpu.dot_dimension_numbers<[1], [0], [0], [1], [0, 0, 1, 1], [], []>} : vector<8x32xbf16>, vector<32x128xbf16>, vector<8x128xf32> -> vector<8x128xf32>
    %c0_3 = arith.constant 0 : index
    %c0_4 = arith.constant 0 : index
    %4 = vector.load %arg3[%c0_3, %c0_4] : memref<1x128xf32, #tpu.memory_space<vmem>>, vector<1x128xf32>
    %5 = vector.broadcast %4 : vector<1x128xf32> to vector<8x128xf32>
    %6 = arith.addf %3, %5 : vector<8x128xf32>
    %cst_5 = arith.constant 0.000000e+00 : f32
    %7 = vector.broadcast %cst_5 : f32 to vector<8x128xf32>
    %8 = arith.maximumf %6, %7 : vector<8x128xf32>
    %9 = arith.truncf %8 : vector<8x128xf32> to vector<8x128xbf16>
    %c0_6 = arith.constant 0 : index
    %c0_7 = arith.constant 0 : index
    %10 = vector.load %arg4[%c0_6, %c0_7] : memref<128x128xbf16, #tpu.memory_space<vmem>>, vector<128x128xbf16>
    %cst_8 = arith.constant dense<0.000000e+00> : vector<8x128xf32>
    %11 = tpu.matmul %9, %10, %cst_8 {dimension_numbers = #tpu.dot_dimension_numbers<[1], [0], [0], [1], [0, 0, 1, 1], [], []>} : vector<8x128xbf16>, vector<128x128xbf16>, vector<8x128xf32> -> vector<8x128xf32>
    %c0_9 = arith.constant 0 : index
    %c0_10 = arith.constant 0 : index
    %12 = vector.load %arg5[%c0_9, %c0_10] : memref<1x128xf32, #tpu.memory_space<vmem>>, vector<1x128xf32>
    %13 = vector.broadcast %12 : vector<1x128xf32> to vector<8x128xf32>
    %14 = arith.addf %11, %13 : vector<8x128xf32>
    %cst_11 = arith.constant 0.000000e+00 : f32
    %15 = vector.broadcast %cst_11 : f32 to vector<8x128xf32>
    %16 = arith.maximumf %14, %15 : vector<8x128xf32>
    %17 = arith.truncf %16 : vector<8x128xf32> to vector<8x128xbf16>
    %c0_12 = arith.constant 0 : index
    %c0_13 = arith.constant 0 : index
    %18 = vector.load %arg6[%c0_12, %c0_13] : memref<128x6xbf16, #tpu.memory_space<vmem>>, vector<128x6xbf16>
    %cst_14 = arith.constant dense<0.000000e+00> : vector<8x6xf32>
    %19 = tpu.matmul %17, %18, %cst_14 {dimension_numbers = #tpu.dot_dimension_numbers<[1], [0], [0], [1], [0, 0, 1, 1], [], []>} : vector<8x128xbf16>, vector<128x6xbf16>, vector<8x6xf32> -> vector<8x6xf32>
    %c0_15 = arith.constant 0 : index
    %c0_16 = arith.constant 0 : index
    %20 = vector.load %arg7[%c0_15, %c0_16] : memref<1x6xf32, #tpu.memory_space<vmem>>, vector<1x6xf32>
    %21 = vector.broadcast %20 : vector<1x6xf32> to vector<8x6xf32>
    %22 = arith.addf %19, %21 : vector<8x6xf32>
    %cst_17 = arith.constant dense<0xFF800000> : vector<8xf32>
    %23 = vector.multi_reduction <maximumf>, %22, %cst_17 [1] : vector<8x6xf32> to vector<8xf32>
    %24 = vector.shape_cast %23 : vector<8xf32> to vector<8x1xf32>
    %25 = vector.broadcast %24 : vector<8x1xf32> to vector<8x6xf32>
    %26 = arith.subf %22, %25 : vector<8x6xf32>
    %27 = math.exp %26 : vector<8x6xf32>
    %cst_18 = arith.constant dense<0.000000e+00> : vector<8xf32>
    %28 = vector.multi_reduction <add>, %27, %cst_18 [1] : vector<8x6xf32> to vector<8xf32>
    %29 = vector.shape_cast %28 : vector<8xf32> to vector<8x1xf32>
    %30 = math.log %29 : vector<8x1xf32>
    %31 = vector.broadcast %30 : vector<8x1xf32> to vector<8x6xf32>
    %32 = arith.subf %26, %31 : vector<8x6xf32>
    %c0_19 = arith.constant 0 : index
    %c0_20 = arith.constant 0 : index
    %33 = vector.load %arg8[%c0_19, %c0_20] : memref<8x6xf32, #tpu.memory_space<vmem>>, vector<8x6xf32>
    tpu.vector_store %arg8[%c0_19, %c0_20], %32 {strides = array<i32>} : memref<8x6xf32, #tpu.memory_space<vmem>>, vector<8x6xf32>,
    return
  }
  func.func @transform_0(%arg0: i32) -> (i32, i32) {
    %c0_i32 = arith.constant 0 : i32
    %c0_i32_0 = arith.constant 0 : i32
    return %arg0, %c0_i32 : i32, i32
  }
  func.func @transform_1(%arg0: i32) -> (i32, i32) {
    %c0_i32 = arith.constant 0 : i32
    %c0_i32_0 = arith.constant 0 : i32
    %c0_i32_1 = arith.constant 0 : i32
    return %c0_i32, %c0_i32_0 : i32, i32
  }
  func.func @transform_2(%arg0: i32) -> (i32, i32) {
    %c0_i32 = arith.constant 0 : i32
    %c0_i32_0 = arith.constant 0 : i32
    %c0_i32_1 = arith.constant 0 : i32
    return %c0_i32, %c0_i32_0 : i32, i32
  }
  func.func @transform_3(%arg0: i32) -> (i32, i32) {
    %c0_i32 = arith.constant 0 : i32
    %c0_i32_0 = arith.constant 0 : i32
    %c0_i32_1 = arith.constant 0 : i32
    return %c0_i32, %c0_i32_0 : i32, i32
  }
  func.func @transform_4(%arg0: i32) -> (i32, i32) {
    %c0_i32 = arith.constant 0 : i32
    %c0_i32_0 = arith.constant 0 : i32
    %c0_i32_1 = arith.constant 0 : i32
    return %c0_i32, %c0_i32_0 : i32, i32
  }
  func.func @transform_5(%arg0: i32) -> (i32, i32) {
    %c0_i32 = arith.constant 0 : i32
    %c0_i32_0 = arith.constant 0 : i32
    %c0_i32_1 = arith.constant 0 : i32
    return %c0_i32, %c0_i32_0 : i32, i32
  }
  func.func @transform_6(%arg0: i32) -> (i32, i32) {
    %c0_i32 = arith.constant 0 : i32
    %c0_i32_0 = arith.constant 0 : i32
    %c0_i32_1 = arith.constant 0 : i32
    return %c0_i32, %c0_i32_0 : i32, i32
  }
  func.func @transform_7(%arg0: i32) -> (i32, i32) {
    %c0_i32 = arith.constant 0 : i32
    %c0_i32_0 = arith.constant 0 : i32
    return %arg0, %c0_i32 : i32, i32
  }
}

</mosaic_0001>

<bundles_post_ra>
// kernel: discrete_policy_forward.1
= control target key start
LH: loop header
LB: loop body
LE: loop exit
PB: predicated region body
PF: predicated region fallthrough
CT: control target
= control target key end

     0   :  { %12 = vsyncpa [#allocation3], 0  ;;  %s705_s0 = inlined_call_operand.vmem [shape: f32[8,32], index: 0, kind: input, shape index: {}]   ;;  %s706_s1 = inlined_call_operand.hbm [shape: bf16[32,128], index: 1, kind: input, shape index: {}]   ;;  %s707_s2 = inlined_call_operand.vmem [shape: f32[1,128], index: 2, kind: input, shape index: {}]   ;;  %s708_s3 = inlined_call_operand.vmem [shape: bf16[128,128], index: 3, kind: input, shape index: {}]   ;;  %s709_s4 = inlined_call_operand.hbm [shape: f32[1,128], index: 4, kind: input, shape index: {}]   ;;  %s710_s5 = inlined_call_operand.vmem [shape: bf16[128,6], index: 5, kind: input, shape index: {}]   ;;  %s711_s6 = inlined_call_operand.vmem [shape: f32[1,6], index: 6, kind: input, shape index: {}]   ;;  %s712_s7 = inlined_call_operand.hbm [shape: f32[8,6], index: 7, kind: output, shape index: {}]  }
   0x1   :  { %13 = vsyncpa [#allocation6], 0 }
   0x2   :  { %14 = vsyncpa [#allocation4], 0  ;;  %s565_s24 = smov [#allocation2]  }
   0x3   :  { %s22_s25 = sshll.u32 %s565_s24, 4  ;;  %s23_s25 = int_to_ptr.vmem [resolvable:$true] %s22_s25 }
   0x4   :  { %s507_s26 = scalar_lea.vmem %s23_s25, 256  ;;  %p512_p1 = scmp.lt.s32.totalorder %s23_s25, %s23_s25 }
   0x5   :  { %p508_p0 = scmp.ne.s32.totalorder %s23_s25, %s507_s26  ;;  %p513_p2 = scmp.lt.s32.totalorder %s507_s26, %s507_s26 }
   0x7   :  { %p514_p3 = por %p513_p2, %p512_p1 }
   0x9   :  { %p515_p4 = pnand %p514_p3, %p508_p0 }
   0xb   :  { %518 = shalt.err (!%p515_p4)
}
   0xc   :  { %s566_s27 = smov 64   ;;  %s567_s28 = smov 4  }
   0xd   :  { %28 = dma.hbm_to_vmem [thread:$0]  %s706_s1, 256, %s23_s25, [#allocation3], %s566_s27, %s566_s27, %s567_s28  }
   0xe   :  { %s568_s8 = smov [#allocation5]  }
   0xf   :  { %s39_s9 = sshll.u32 %s568_s8, 4  ;;  %s40_s9 = int_to_ptr.vmem [resolvable:$true] %s39_s9 }
  0x10   :  { %s527_s10 = scalar_lea.vmem %s40_s9, 16  ;;  %s531_s11 = scalar_lea.vmem %s40_s9, 32 }
  0x11   :  { %p528_p5 = scmp.ne.s32.totalorder %s40_s9, %s527_s10  ;;  %p532_p6 = scmp.lt.s32.totalorder %s40_s9, %s40_s9 }
  0x12   :  { %p533_p7 = scmp.lt.s32.totalorder %s531_s11, %s527_s10 }
  0x14   :  { %p534_p8 = por %p533_p7, %p532_p6 }
  0x16   :  { %p535_p9 = pnand %p534_p8, %p528_p5 }
  0x18   :  { %538 = shalt.err (!%p535_p9)
}
  0x19   :  { %42 = dma.hbm_to_vmem [thread:$0]  %s709_s4, 16, %s40_s9, [#allocation6]  }
  0x1a   :  { %559 = dma.done.wait [#allocation3], 256  }
  0x1b   :  { %560 = vsyncadd [#allocation3], 4294967040 }
  0x1c   :  { %561 = dma.done.wait [#allocation6], 16  }
  0x1d   :  { %562 = vsyncadd [#allocation6], 4294967280  ;;  %v569_v0 = vmov 0.0   ;;  %vm570_vm0 = vmmov 0   ;;  %v477_v1 = vld [vmem:[#allocation2 + $0x8] sm:$0xff]   ;;  %v478_v2 = vld [vmem:[#allocation2] sm:$0xff]  }
  0x1e   :  { %422 = vmatprep.subr.bf16.mxu0 %v569_v0  ;;  %426 = vmatprep.mubr.msk.bf16.mxu0 %vm570_vm0, %v569_v0  ;;  %v54_v3 = vld [vmem:[%s705_s0] sm:$0xff]  ;;  %v479_v4 = vld [vmem:[%s708_s3 + $0x38] sm:$0xff]   ;;  %v480_v6 = vld [vmem:[%s708_s3 + $0x30] sm:$0xff]   ;;  %vm79_vm1 = vcmask 261120   ;;  %vm349_vm2 = vcmask 48128  }
  0x1f   :  { %430 = vmatprep.subr.bf16.mxu1 %v569_v0  ;;  %446 = vmatprep.mubr.msk.bf16.mxu1 %vm570_vm0, %v569_v0  ;;  %v55_v5 = vpack.c.bf16 %v54_v3, %v54_v3  ;;  %v481_v7 = vld [vmem:[%s708_s3 + $0x28] sm:$0xff]   ;;  %v482_v8 = vld [vmem:[%s708_s3 + $0x20] sm:$0xff]   ;;  %v483_v9 = vld [vmem:[%s708_s3 + $0x18] sm:$0xff]  }
  0x20   :  { %423 = vmatpush3.bf16.msra.mxu0 %v477_v1  ;;  %431 = vmatpush3.bf16.msra.mxu1 %v479_v4  ;;  %v484_v10 = vld [vmem:[%s708_s3 + $0x10] sm:$0xff]   ;;  %v485_v11 = vld [vmem:[%s708_s3 + $0x8] sm:$0xff]   ;;  %v486_v12 = vld [vmem:[%s708_s3] sm:$0xff]  }
  0x21   :  { %424 = vmatprep.subr.bf16.mxu0 %v569_v0  ;;  %432 = vmatprep.subr.bf16.mxu1 %v569_v0  ;;  %v487_v13 = vld [vmem:[%s710_s5 + $0x38] sm:$0xff]   ;;  %v488_v14 = vld [vmem:[%s710_s5 + $0x30] sm:$0xff]   ;;  %v489_v15 = vld [vmem:[%s710_s5 + $0x28] sm:$0xff]  }
  0x22   :  { %v490_v16 = vld [vmem:[%s710_s5 + $0x20] sm:$0xff]   ;;  %v491_v17 = vld [vmem:[%s710_s5 + $0x18] sm:$0xff]   ;;  %v492_v18 = vld [vmem:[%s710_s5 + $0x10] sm:$0xff]  }
  0x23   :  { %v379_v19 = vld [vmem:[%s707_s2] ss:$0 sm:$0xff]  ;;  %v493_v27 = vld [vmem:[%s710_s5 + $0x8] sm:$0xff]   ;;  %v383_v29 = vld [vmem:[#allocation5] ss:$0 sm:$0xff] }
  0x24   :  { %425 = vmatpush3.bf16.msra.mxu0 %v478_v2  ;;  %433 = vmatpush3.bf16.msra.mxu1 %v480_v6  ;;  %v494_v28 = vld [vmem:[%s710_s5] sm:$0xff]   ;;  %s571_s5 = smov [#allocation7]  }
  0x25   :  { %450 = vmatprep.subr.bf16.mxu0 %v569_v0  ;;  %434 = vmatprep.subr.bf16.mxu1 %v569_v0  ;;  %v392_v37 = vld [vmem:[%s711_s6] ss:$0 sm:$0xff]  ;;  %s369_s6 = sshll.u32 %s571_s5, 4  ;;  %s370_s6 = int_to_ptr.vmem [resolvable:$true] %s369_s6 }
  0x26   :  { %s539_s21 = scalar_lea.vmem %s370_s6, 128  ;;  %p544_p11 = scmp.lt.s32.totalorder %s370_s6, %s370_s6 }
  0x27   :  { %427 = vmatmul.mubr.msk.bf16.vlgmr.msra.gmra.mxu0 %vm79_vm1, %v55_v5  ;;  %p540_p10 = scmp.ne.s32.totalorder %s370_s6, %s539_s21  ;;  %p545_p12 = scmp.lt.s32.totalorder %s539_s21, %s539_s21 }
  0x28   :  { %466 = vmatprep.mubr.msk.bf16.mxu0 %vm570_vm0, %v569_v0  ;;  %435 = vmatpush3.bf16.msra.mxu1 %v481_v7 }
  0x29   :  { %436 = vmatprep.subr.bf16.mxu1 %v569_v0  ;;  %451 = vmatpush3.bf16.msra.mxu0 %v487_v13  ;;  %p546_p13 = por %p545_p12, %p544_p11 }
  0x2a   :  { %452 = vmatprep.subr.bf16.mxu0 %v569_v0 }
  0x2b   :  { %p547_p0 = pnand %p546_p13, %p540_p10 }
  0x2c   :  { %437 = vmatpush3.bf16.msra.mxu1 %v482_v8 }
  0x2d   :  { %438 = vmatprep.subr.bf16.mxu1 %v569_v0  ;;  %453 = vmatpush3.bf16.msra.mxu0 %v488_v14 }
  0x2e   :  { %454 = vmatprep.subr.bf16.mxu0 %v569_v0 }
  0x30   :  { %439 = vmatpush3.bf16.msra.mxu1 %v483_v9 }
  0x31   :  { %440 = vmatprep.subr.bf16.mxu1 %v569_v0  ;;  %455 = vmatpush3.bf16.msra.mxu0 %v489_v15 }
  0x32   :  { %456 = vmatprep.subr.bf16.mxu0 %v569_v0 }
  0x34   :  { %441 = vmatpush3.bf16.msra.mxu1 %v484_v10 }
  0x35   :  { %442 = vmatprep.subr.bf16.mxu1 %v569_v0  ;;  %457 = vmatpush3.bf16.msra.mxu0 %v490_v16 }
  0x36   :  { %458 = vmatprep.subr.bf16.mxu0 %v569_v0 }
  0x38   :  { %443 = vmatpush3.bf16.msra.mxu1 %v485_v11 }
  0x39   :  { %444 = vmatprep.subr.bf16.mxu1 %v569_v0  ;;  %459 = vmatpush3.bf16.msra.mxu0 %v491_v17 }
  0x3a   :  { %460 = vmatprep.subr.bf16.mxu0 %v569_v0 }
  0x3c   :  { %445 = vmatpush3.bf16.msra.mxu1 %v486_v12 }
  0x3d   :  { %461 = vmatpush3.bf16.msra.mxu0 %v492_v18 }
  0x3e   :  { %462 = vmatprep.subr.bf16.mxu0 %v569_v0 }
  0x41   :  { %463 = vmatpush3.bf16.msra.mxu0 %v493_v27 }
  0x42   :  { %464 = vmatprep.subr.bf16.mxu0 %v569_v0 }
  0x45   :  { %465 = vmatpush3.bf16.msra.mxu0 %v494_v28 }
  0xe7   :  { %v117_v20 = vpop.f32.mrf.mxu0 }
  0xe8   :  { %v118_v21 = vadd.f32 %v379_v19, %v117_v20 }
  0xe9   :  { %v428_v22 = vpop.f32.mrf.mxu0 }
  0xea   :  { %v123_v23 = vmax.f32 %v118_v21, 0.0 }
  0xeb   :  { %v120_v24 = vpop.f32.mrf.mxu0 }
  0xec   :  { %v124_v25 = vpack.c.bf16 %v123_v23, %v123_v23 }
  0xed   :  { %v429_v26 = vpop.f32.mrf.mxu0 }
  0xee   :  { %447 = vmatmul.mubr.bf16.vlgmr.msra.gmra.mxu1 %v124_v25 }
 0x1ae   :  { %v230_v30 = vpop.f32.mrf.mxu1 }
 0x1af   :  { %v231_v31 = vadd.f32 %v383_v29, %v230_v30 }
 0x1b0   :  { %v448_v32 = vpop.f32.mrf.mxu1 }
 0x1b1   :  { %v236_v33 = vmax.f32 %v231_v31, 0.0 }
 0x1b2   :  { %v233_v34 = vpop.f32.mrf.mxu1 }
 0x1b3   :  { %v237_v35 = vpack.c.bf16 %v236_v33, %v236_v33 }
 0x1b4   :  { %v449_v36 = vpop.f32.mrf.mxu1 }
 0x1b5   :  { %467 = vmatmul.mubr.bf16.vlgmr.msra.gmra.mxu0 %v237_v35 }
 0x275   :  { %v343_v38 = vpop.f32.mrf.mxu0 }
 0x276   :  { %v344_v39 = vadd.f32 %v392_v37, %v343_v38 }
 0x277   :  { %v468_v40 = vpop.f32.mrf.mxu0 }
 0x278   :  { %v350_v41 = vsel %vm349_vm2, %v344_v39, -inf }
 0x279   :  { %351 = vmax.xlane.f32.xlu0 %v350_v41  ;;  %v346_v42 = vpop.f32.mrf.mxu0 }
 0x27b   :  { %v469_v43 = vpop.f32.mrf.mxu0 }
 0x302   :  { %v352_v44 = vpop.xlane.xlu0 %351 }
 0x303   :  { %v353_v45 = vsub.f32 %v344_v39, %v352_v44 }
 0x305   :  { %v354_v46 = vmul.f32 1.442695, %v353_v45 }
 0x307   :  { %495 = vpow2.f32 %v354_v46 }
 0x314   :  { %v496_v47 = vpop.eup %495 }
 0x315   :  { %v356_v48 = vsel %vm349_vm2, %v496_v47, 0.0 }
 0x316   :  { %357 = vadd.xlane.f32.xlu0 %v356_v48 }
 0x39f   :  { %v358_v49 = vpop.xlane.xlu0 %357 }
 0x3a0   :  { %497 = vlog2.f32 %v358_v49 }
 0x3ad   :  { %v498_v50 = vpop.eup %497 }
 0x3ae   :  { %v360_v51 = vmul.f32 0.6931472, %v498_v50 }
 0x3b0   :  { %v361_v52 = vsub.f32 %v353_v45, %v360_v51 }
 0x3b2   :  { %362 = vst.msk [vmem:[#allocation7] sm:$0xff] %vm349_vm2, %v361_v52 }
 0x3b3   :  { %550 = shalt.err (!%p547_p0)
}
 0x3b4   :  { %372 = dma.vmem_to_hbm [thread:$0]  %s370_s6, 128, %s712_s7, [#allocation4]  }
 0x3b5   :  { %563 = dma.done.wait [#allocation4], 128  }
 0x3b6   :  { %564 = vsyncadd [#allocation4], 4294967168 }
 0x3b7   :  { %376 = vsyncpa [#allocation3], 1 }
 0x3b8   :  { %377 = vsyncpa [#allocation6], 1 }
 0x3b9   :  { %378 = vsyncpa [#allocation4], 1 }

</bundles_post_ra>
